<compile_context>
chip_gen: v6e
topology: v6e:2x2x1
jax: 0.10.0
libtpu: 0.0.40
codegen_flags: <defaults>
</compile_context>

<pallas_src>
import math
import functools

import jax
import jax.numpy as jnp
from jax import lax
from jax.experimental import pallas as pl
from jax.experimental.pallas import tpu as pltpu


def _bilinear_kernel(x_ref, y_ref, w_ref, b_ref, o_ref, inter_ref):
    # x_ref:     (1, tS1, D1)     VMEM
    # y_ref:     (1, tS2, D2)     VMEM
    # w_ref:     (1, D1, D2)      VMEM (resident across all s1/s2 tiles of l)
    # b_ref:     (1,)             SMEM scalar bias
    # o_ref:     (1, 1, tS1, tS2) output tile
    # inter_ref: (tS1, D2)        VMEM scratch caching X @ W across s2 tiles

    # Recompute X @ W only when the s2 tile index wraps to 0, i.e. once per
    # (b, l, s1-tile); reuse it for every s2 tile of that slice.
    @pl.when(pl.program_id(3) == 0)
    def _():
        inter_ref[...] = jnp.dot(
            x_ref[0], w_ref[0], preferred_element_type=jnp.float32
        ).astype(inter_ref.dtype)

    # (tS1, D2) x (tS2, D2) contracted on the last axis of both operands:
    # lowers to the MXU's transposed-operand form, no explicit y.T relayout.
    final = lax.dot_general(
        inter_ref[...], y_ref[0],
        dimension_numbers=(((1,), (1,)), ((), ())),
        preferred_element_type=jnp.float32)

    o_ref[0, 0] = (final + b_ref[0]).astype(o_ref.dtype)


def bilinear_matrix_attention(matrix_1, matrix_2, weight, bias, *,
                              use_input_biases=False):
    """Pallas implementation of BilinearMatrixAttention.forward."""
    if use_input_biases:
        ones1 = jnp.ones(matrix_1.shape[:-1] + (1,), matrix_1.dtype)
        ones2 = jnp.ones(matrix_2.shape[:-1] + (1,), matrix_2.dtype)
        matrix_1 = jnp.concatenate([matrix_1, ones1], axis=-1)
        matrix_2 = jnp.concatenate([matrix_2, ones2], axis=-1)
        # TODO(synk): if D were ever tiled, pad the +1 column to a lane
        # multiple and mask; here D stays a full-extent block so odd D is ok.

    squeeze_label = (weight.ndim == 2)
    if squeeze_label:
        weight = weight[None]                      # (1, D1, D2)

    B, S1, D1 = matrix_1.shape
    B2, S2, D2 = matrix_2.shape
    L = weight.shape[0]
    assert B2 == B and weight.shape == (L, D1, D2)

    # Common compute dtype: bf16 inputs stay bf16 (full-rate MXU, half the
    # HBM traffic); f32 accumulation happens inside the kernel via
    # preferred_element_type.  f32 inputs stay f32 (exact vs. torch).
    compute_dtype = jnp.result_type(matrix_1.dtype, matrix_2.dtype, weight.dtype)
    matrix_1 = matrix_1.astype(compute_dtype)
    matrix_2 = matrix_2.astype(compute_dtype)
    weight = weight.astype(compute_dtype)

    # Tile S1 (sublane axis, multiple of 8) and S2 (lane axis, multiple of 128
    # so output stores are unmasked / lane-dense).  Fall back to the full
    # extent for small or non-divisible sizes (full-extent blocks are legal).
    tS1 = next((c for c in (256, 128, 64, 32, 16, 8) if S1 % c == 0), S1)
    tS2 = next((c for c in (512, 384, 256, 128) if S2 % c == 0), S2)
    n_s1 = S1 // tS1
    n_s2 = S2 // tS2

    out_dtype = jnp.float32
    in_esz = jnp.dtype(compute_dtype).itemsize
    out_esz = jnp.dtype(out_dtype).itemsize

    # Conservative VMEM budget: double-buffered inputs/outputs + scratch.
    # Capped below v7x's 64 MiB physical VMEM (also fine on v5e/v6e's 128).
    step_bytes = (2 * (tS1 * D1 + tS2 * D2 + D1 * D2) * in_esz
                  + 2 * tS1 * tS2 * out_esz
                  + tS1 * D2 * in_esz)
    vmem_limit = int(min(max(32 * 1024 * 1024, 2 * step_bytes),
                         56 * 1024 * 1024))

    flops = 2 * B * L * (S1 * D1 * D2 + S1 * D2 * S2)
    bytes_accessed = ((matrix_1.size + matrix_2.size + weight.size) * in_esz
                      + B * L * S1 * S2 * out_esz)

    out = pl.pallas_call(
        _bilinear_kernel,
        out_shape=jax.ShapeDtypeStruct((B, L, S1, S2), out_dtype),
        grid_spec=pltpu.PrefetchScalarGridSpec(
            num_scalar_prefetch=0,
            grid=(B, L, n_s1, n_s2),
            in_specs=[
                pl.BlockSpec((1, tS1, D1), lambda b, l, i, j: (b, i, 0)),
                pl.BlockSpec((1, tS2, D2), lambda b, l, i, j: (b, j, 0)),
                pl.BlockSpec((1, D1, D2), lambda b, l, i, j: (l, 0, 0)),
                pl.BlockSpec(memory_space=pltpu.MemorySpace.SMEM),
            ],
            out_specs=pl.BlockSpec((1, 1, tS1, tS2),
                                   lambda b, l, i, j: (b, l, i, j)),
            scratch_shapes=[pltpu.VMEM((tS1, D2), compute_dtype)],
        ),
        compiler_params=pltpu.CompilerParams(
            # B / L / S1 can shard across TensorCores; S2 carries the X@W
            # scratch, so it must stay "arbitrary" (and is innermost).
            dimension_semantics=("parallel", "parallel", "parallel",
                                 "arbitrary"),
            vmem_limit_bytes=vmem_limit,
        ),
        cost_estimate=pl.CostEstimate(
            flops=flops, transcendentals=0, bytes_accessed=bytes_accessed),
    )(matrix_1, matrix_2, weight, bias.astype(jnp.float32))

    if squeeze_label:
        out = out[:, 0]                            # squeeze(1) when n_labels==1
    return out


def xavier_uniform(key, shape, dtype=jnp.float32):
    # Matches torch.nn.init.xavier_uniform_ fan computation:
    #  2D (out, in):       fan_in = in,          fan_out = out
    #  3D (L, D1, D2):     fan_in = D1 * D2,     fan_out = L * D2
    if len(shape) == 2:
        fan_in, fan_out = shape[1], shape[0]
    else:
        rf = math.prod(shape[2:])
        fan_in, fan_out = shape[1] * rf, shape[0] * rf
    bound = math.sqrt(6.0 / (fan_in + fan_out))
    return jax.random.uniform(key, shape, dtype, minval=-bound, maxval=bound)


if __name__ == "__main__":
    key = jax.random.PRNGKey(0)
    k1, k2, kw, kw2 = jax.random.split(key, 4)

    B, S1, S2 = 2, 8, 8
    D1 = D2 = 32

    matrix_1 = jax.random.normal(k1, (B, S1, D1), jnp.float32)
    matrix_2 = jax.random.normal(k2, (B, S2, D2), jnp.float32)
    bias = jnp.zeros((1,), jnp.float32)     # reset_parameters fills bias with 0

    # --- case 1: n_labels == 1, no input biases (default module config) -----
    weight = xavier_uniform(kw, (D1, D2))
    fn = jax.jit(functools.partial(bilinear_matrix_attention,
                                   use_input_biases=False))
    out = jax.block_until_ready(fn(matrix_1, matrix_2, weight, bias))

    ref = jnp.einsum('bsd,de,bte->bst', matrix_1, weight, matrix_2) + bias[0]
    assert out.shape == ref.shape, (out.shape, ref.shape)
    assert jnp.allclose(out, ref, atol=1e-4, rtol=1e-4)

    # --- case 2: n_labels > 1 with use_input_biases=True --------------------
    n_labels = 3
    weight2 = xavier_uniform(kw2, (n_labels, D1 + 1, D2 + 1))
    fn2 = jax.jit(functools.partial(bilinear_matrix_attention,
                                    use_input_biases=True))
    out2 = jax.block_until_ready(fn2(matrix_1, matrix_2, weight2, bias))

    m1a = jnp.concatenate([matrix_1, jnp.ones((B, S1, 1), jnp.float32)], -1)
    m2a = jnp.concatenate([matrix_2, jnp.ones((B, S2, 1), jnp.float32)], -1)
    ref2 = jnp.einsum('bsd,lde,bte->blst', m1a, weight2, m2a) + bias[0]
    assert out2.shape == ref2.shape, (out2.shape, ref2.shape)
    assert jnp.allclose(out2, ref2, atol=1e-4, rtol=1e-4)

    print("KERNEL_OK")
</pallas_src>

<mosaic_0001>
module attributes {stable_mosaic.version = 11 : i64} {
  func.func @_bilinear_kernel(%arg0: i32, %arg1: i32, %arg2: i32, %arg3: i32, %arg4: memref<1x8x32xf32, #tpu.memory_space<vmem>>, %arg5: memref<1x8x32xf32, #tpu.memory_space<vmem>>, %arg6: memref<1x32x32xf32, #tpu.memory_space<vmem>>, %arg7: memref<1xf32, #tpu.memory_space<smem>>, %arg8: memref<1x1x8x8xf32, #tpu.memory_space<vmem>>, %arg9: memref<8x32xf32, #tpu.memory_space<vmem>>) attributes {dimension_semantics = [#tpu.dimension_semantics<parallel>, #tpu.dimension_semantics<parallel>, #tpu.dimension_semantics<parallel>, #tpu.dimension_semantics<arbitrary>], iteration_bounds = array<i64: 2, 1, 1, 1>, scalar_prefetch = 0 : i64, scratch_operands = 1 : i64, tpu.core_type = #tpu.core_type<tc>, window_params = [{transform_indices = @transform_0, window_bounds = array<i64: 1, 8, 32>}, {transform_indices = @transform_1, window_bounds = array<i64: 1, 8, 32>}, {transform_indices = @transform_2, window_bounds = array<i64: 1, 32, 32>}, {transform_indices = @transform_3, window_bounds = array<i64: 1>}, {transform_indices = @transform_4, window_bounds = array<i64: 1, 1, 8, 8>}]} {
    %c0_i32 = arith.constant 0 : i32
    %0 = arith.cmpi eq, %arg3, %c0_i32 : i32
    %1 = arith.extui %0 : i1 to i32
    %c0_i32_0 = arith.constant 0 : i32
    %2 = arith.cmpi ne, %1, %c0_i32_0 : i32
    scf.if %2 {
      %c0_10 = arith.constant 0 : index
      %c0_11 = arith.constant 0 : index
      %c0_12 = arith.constant 0 : index
      %13 = vector.load %arg4[%c0_10, %c0_11, %c0_12] : memref<1x8x32xf32, #tpu.memory_space<vmem>>, vector<1x8x32xf32>
      %14 = vector.shape_cast %13 : vector<1x8x32xf32> to vector<8x32xf32>
      %c0_13 = arith.constant 0 : index
      %c0_14 = arith.constant 0 : index
      %c0_15 = arith.constant 0 : index
      %15 = vector.load %arg6[%c0_13, %c0_14, %c0_15] : memref<1x32x32xf32, #tpu.memory_space<vmem>>, vector<1x32x32xf32>
      %16 = vector.shape_cast %15 : vector<1x32x32xf32> to vector<32x32xf32>
      %cst_16 = arith.constant dense<0.000000e+00> : vector<8x32xf32>
      %17 = tpu.matmul %14, %16, %cst_16 {dimension_numbers = #tpu.dot_dimension_numbers<[1], [0], [0], [1], [0, 0, 1, 1], [], []>} : vector<8x32xf32>, vector<32x32xf32>, vector<8x32xf32> -> vector<8x32xf32>
      %c0_17 = arith.constant 0 : index
      %c0_18 = arith.constant 0 : index
      %18 = vector.load %arg9[%c0_17, %c0_18] : memref<8x32xf32, #tpu.memory_space<vmem>>, vector<8x32xf32>
      tpu.vector_store %arg9[%c0_17, %c0_18], %17 {strides = array<i32>} : memref<8x32xf32, #tpu.memory_space<vmem>>, vector<8x32xf32>,
    } else {
    }
    %c0 = arith.constant 0 : index
    %c0_1 = arith.constant 0 : index
    %3 = vector.load %arg9[%c0, %c0_1] : memref<8x32xf32, #tpu.memory_space<vmem>>, vector<8x32xf32>
    %c0_2 = arith.constant 0 : index
    %c0_3 = arith.constant 0 : index
    %c0_4 = arith.constant 0 : index
    %4 = vector.load %arg5[%c0_2, %c0_3, %c0_4] : memref<1x8x32xf32, #tpu.memory_space<vmem>>, vector<1x8x32xf32>
    %5 = vector.shape_cast %4 : vector<1x8x32xf32> to vector<8x32xf32>
    %cst = arith.constant dense<0.000000e+00> : vector<8x8xf32>
    %6 = tpu.matmul %3, %5, %cst {dimension_numbers = #tpu.dot_dimension_numbers<[1], [1], [0], [0], [0, 0, 1, 0], [], []>} : vector<8x32xf32>, vector<8x32xf32>, vector<8x8xf32> -> vector<8x8xf32>
    %c0_5 = arith.constant 0 : index
    %7 = memref.load %arg7[%c0_5] : memref<1xf32, #tpu.memory_space<smem>>
    %8 = vector.broadcast %7 : f32 to vector<8x8xf32>
    %9 = arith.addf %6, %8 : vector<8x8xf32>
    %c0_6 = arith.constant 0 : index
    %c0_7 = arith.constant 0 : index
    %c0_8 = arith.constant 0 : index
    %c0_9 = arith.constant 0 : index
    %10 = vector.load %arg8[%c0_6, %c0_7, %c0_8, %c0_9] : memref<1x1x8x8xf32, #tpu.memory_space<vmem>>, vector<1x1x8x8xf32>
    %11 = vector.shape_cast %10 : vector<1x1x8x8xf32> to vector<8x8xf32>
    %12 = vector.shape_cast %9 : vector<8x8xf32> to vector<1x1x8x8xf32>
    tpu.vector_store %arg8[%c0_6, %c0_7, %c0_8, %c0_9], %12 {strides = array<i32>} : memref<1x1x8x8xf32, #tpu.memory_space<vmem>>, vector<1x1x8x8xf32>,
    return
  }
  func.func @transform_0(%arg0: i32, %arg1: i32, %arg2: i32, %arg3: i32) -> (i32, i32, i32) {
    %c0_i32 = arith.constant 0 : i32
    %c0_i32_0 = arith.constant 0 : i32
    return %arg0, %arg2, %c0_i32 : i32, i32, i32
  }
  func.func @transform_1(%arg0: i32, %arg1: i32, %arg2: i32, %arg3: i32) -> (i32, i32, i32) {
    %c0_i32 = arith.constant 0 : i32
    %c0_i32_0 = arith.constant 0 : i32
    return %arg0, %arg3, %c0_i32 : i32, i32, i32
  }
  func.func @transform_2(%arg0: i32, %arg1: i32, %arg2: i32, %arg3: i32) -> (i32, i32, i32) {
    %c0_i32 = arith.constant 0 : i32
    %c0_i32_0 = arith.constant 0 : i32
    %c0_i32_1 = arith.constant 0 : i32
    return %arg1, %c0_i32, %c0_i32_0 : i32, i32, i32
  }
  func.func @transform_3(%arg0: i32, %arg1: i32, %arg2: i32, %arg3: i32) -> i32 {
    %c0_i32 = arith.constant 0 : i32
    %c0_i32_0 = arith.constant 0 : i32
    return %c0_i32 : i32
  }
  func.func @transform_4(%arg0: i32, %arg1: i32, %arg2: i32, %arg3: i32) -> (i32, i32, i32, i32) {
    %c0_i32 = arith.constant 0 : i32
    return %arg0, %arg1, %arg2, %arg3 : i32, i32, i32, i32
  }
}

</mosaic_0001>

<bundles_post_ra>
// kernel: bilinear_matrix_attention.1
= control target key start
LH: loop header
LB: loop body
LE: loop exit
PB: predicated region body
PF: predicated region fallthrough
CT: control target
= control target key end

     0   :  { %s1146_s0 = inlined_call_operand.hbm [shape: f32[2,8,32], index: 0, kind: input, shape index: {}]   ;;  %s1147_s1 = inlined_call_operand.hbm [shape: f32[2,8,32], index: 1, kind: input, shape index: {}]   ;;  %s1148_s2 = inlined_call_operand.hbm [shape: f32[1,32,32], index: 2, kind: input, shape index: {}]   ;;  %s1149_s3 = inlined_call_operand.<no memory space> [shape: f32[1], index: 3, kind: input, shape index: {}]   ;;  %s1150_s4 = inlined_call_operand.hbm [shape: f32[2,1,8,8], index: 4, kind: output, shape index: {}]  }
   0x1   :  { %1151 = sst [smem:[#allocation15_spill]] %s1148_s2 }
   0x2   :  { %9 = sst [smem:[#allocation3]] %s1149_s3 }
   0x3   :  { %10 = vsyncpa [#allocation5], 0 }
   0x4   :  { %12 = vsyncpa [#allocation5 + $0x1], 0 }
   0x5   :  { %13 = vsyncpa [#allocation8], 0 }
   0x6   :  { %15 = vsyncpa [#allocation8 + $0x1], 0 }
   0x7   :  { %16 = vsyncpa [#allocation6], 0 }
   0x8   :  { %18 = vsyncpa [#allocation6 + $0x1], 0  ;;  %s952_s17 = smov 0   ;;  %s954_s18 = smov 0  }
   0x9   :  { %s956_s19 = smov 0   ;;  %s958_s20 = smov 0  }
   0xa   :  { %s960_s21 = smov 0   ;;  %s962_s22 = smov 0  }
   0xb LB: > { %s983_s3 = sadd.s32 4294967295, %s914_s22   ;;  %s619_s23 = sadd.s32 4294967294, %s914_s22   ;;  %s914_s22 = sphi %s962_s22, %s24_s22   ;;  %s910_s21 = sphi %s960_s21, %s1167_s21   ;;  %s906_s20 = sphi %s958_s20, %s1166_s20   ;;  %s902_s19 = sphi %s956_s19, %s1165_s19   ;;  %s898_s18 = sphi %s954_s18, %s1164_s18   ;;  %s894_s17 = sphi %s952_s17, %s1163_s17  }
   0xc   : > { %p72_p0 = scmp.ne.s32.totalorder %s898_s18, %s894_s17  ;;  %p73_p1 = scmp.eq.s32.totalorder %s983_s3, 0 }
   0xd   : > { %p183_p3 = scmp.eq.s32.totalorder %s619_s23, 1  ;;  %p620_p5 = scmp.ge.s32.totalorder %s914_s22, 1 }
   0xe   : > { %p992_p4 = por %p73_p1, %p72_p0  ;;  %p190_p7 = scmp.lt.s32.totalorder %s914_s22, 3 }
   0xf   : > { %p997_p6 = por %p183_p3, %p72_p0  ;;  %s916_s27 = smov [#allocation9]  }
  0x10   : > { %p1002_p8 = pnand %p620_p5, %p190_p7  ;;  %s205_s28 = sshll.u32 %s916_s27, 4  ;;  %s206_s28 = int_to_ptr.vmem [resolvable:$true] %s205_s28 }
  0x11   : > { %s1153_s25 = scalar_select %p997_p6, 1, 0 }
  0x12   : > { %p672_p9 = pneg %p1002_p8  ;;  %s50_s30 = sadd.s32 1, %s910_s21 }
  0x13   : > { %s755_s5 = scalar_lea.vmem %s206_s28, 512  ;;  %p763_p5 = scmp.lt.s32.totalorder %s206_s28, %s206_s28 }
  0x14   : > { %p1011_p11 = pnand %p672_p9, %p73_p1  ;;  %p756_p13 = scmp.ne.s32.totalorder %s206_s28, %s755_s5 }
  0x15   : > { %p764_p7 = scmp.lt.s32.totalorder %s755_s5, %s755_s5 }
  0x16   : > { %p746_p12 = pneg %p1011_p11 }
  0x17   : > { %p765_p2 = por %p764_p7, %p763_p5 }
  0x18   : > { %p758_p0 = pnand %p756_p13, %p746_p12 }
  0x1a   : > { %p759_p3 = pneg %p758_p0 }
  0x1c   : > { %p766_p6 = pnand %p765_p2, %p759_p3 }
  0x1e   : > { %769 = shalt.err (!%p766_p6)
}
  0x1f   : > { %s917_s6 = smov 128   ;;  %s918_s7 = smov 8  }
  0x20   : > { %s1156_s2 = sld [smem:[#allocation15_spill]]  ;;  %p52_p2 = scmp.ge.s32.totalorder %s50_s30, 2 }
  0x21   : > { %s59_s10 = sadd.s32 1, %s902_s19  ;;  %p66_p6 = scmp.ne.s32.totalorder %s902_s19, %s898_s18 }
  0x22   : > { %p67_p9 = scmp.eq.s32.totalorder %s914_s22, 0  ;;  %s1169_s30 = smov (%p52_p2, %s50_s30), 0 }
  0x23   : > { %p1158_p13 = scmp.eq.s32.totalorder %s983_s3, 1  ;;  %s54_s13 = ssub.s32 %s910_s21, %s1169_s30 }
  0x24   : > { %p1029_p12 = por %p67_p9, %p66_p6  ;;  %p57_p3 = scmp.eq.s32.totalorder %s54_s13, 0 }
  0x25   : > { %p1035_p0 = por %p1158_p13, %p66_p6  ;;  %s222_s14 = sand.u32 1, %s902_s19  }
  0x26   : > { %675 = dma.hbm_to_vmem [thread:$0]  (!%p1011_p11), %s1156_s2, 512, %s206_s28, [#allocation8], %s917_s6, %s917_s6, %s918_s7  }
  0x27   : > { %p688_p11 = scmp.lt.s32.totalorder %s914_s22, 2  ;;  %s623_s15 = sshll.u32 %s222_s14, 3 }
  0x28   : > { %s1044_s16 = scalar_select %p57_p3, %s902_s19, %s59_s10  }
  0x29   : > { %s624_s23 = sshll.u32 %s910_s21, 7  ;;  %s226_s5 = scalar_lea.vmem [#allocation4], %s623_s15 }
  0x2a   : > { %s232_s29 = scalar_lea.hbm %s1146_s0, %s624_s23  ;;  %s234_s6 = sshll.u32 %s226_s5, 4  ;;  %s235_s6 = int_to_ptr.vmem [resolvable:$true] %s234_s6 }
  0x2b   : > { %p1052_p5 = pnand %p688_p11, %p1029_p12  ;;  %s1059_s10 = scalar_lea.hbm %s1147_s1, %s624_s23 }
  0x2c   : > { %s241_s13 = sand.u32 1, %s914_s22   ;;  %s223_s2 = scalar_lea.sflag [#allocation5], %s222_s14 }
  0x2d   : > { %p772_p7 = pneg %p1052_p5  ;;  %s783_s27 = scalar_lea.vmem %s235_s6, 128 }
  0x2e   : > { %p784_p2 = scmp.ne.s32.totalorder %s235_s6, %s783_s27  ;;  %s919_s11 = smov [#allocation4]  }
  0x2f   : > { %s788_s28 = sshll.u32 %s919_s11, 4  ;;  %s789_s28 = int_to_ptr.vmem [resolvable:$false] %s788_s28 }
  0x30   : > { %p786_p6 = pnand %p784_p2, %p772_p7  ;;  %s790_s5 = scalar_lea.vmem %s789_s28, 256 }
  0x31   : > { %p791_p12 = scmp.lt.s32.totalorder %s235_s6, %s789_s28  ;;  %p792_p13 = scmp.lt.s32.totalorder %s790_s5, %s783_s27 }
  0x32   : > { %p787_p9 = pneg %p786_p6 }
  0x33   : > { %p793_p11 = por %p792_p13, %p791_p12 }
  0x35   : > { %p794_p3 = pnand %p793_p11, %p787_p9 }
  0x37   : > { %797 = shalt.err (!%p794_p3)
}
  0x38   : > { %679 = dma.hbm_to_vmem [thread:$0]  (!%p1052_p5), %s232_s29, 128, %s235_s6, %s223_s2  }
  0x39   : > { %s245_s14 = scalar_lea.vmem [#allocation7], %s623_s15  ;;  %s242_s8 = scalar_lea.sflag [#allocation8], %s241_s13 }
  0x3a   : > { %s253_s23 = sshll.u32 %s245_s14, 4  ;;  %s920_s11 = smov [#allocation7]   ;;  %s254_s23 = int_to_ptr.vmem [resolvable:$true] %s253_s23 }
  0x3b   : > { %s811_s9 = scalar_lea.vmem %s254_s23, 128  ;;  %s816_s28 = sshll.u32 %s920_s11, 4  ;;  %s817_s28 = int_to_ptr.vmem [resolvable:$false] %s816_s28 }
  0x3c   : > { %p812_p2 = scmp.ne.s32.totalorder %s254_s23, %s811_s9  ;;  %s818_s27 = scalar_lea.vmem %s817_s28, 256 }
  0x3d   : > { %p819_p9 = scmp.lt.s32.totalorder %s254_s23, %s817_s28  ;;  %p820_p12 = scmp.lt.s32.totalorder %s818_s27, %s811_s9 }
  0x3e   : > { %p814_p6 = pnand %p812_p2, %p772_p7 }
  0x3f   : > { %p821_p13 = por %p820_p12, %p819_p9 }
  0x40   : > { %p815_p10 = pneg %p814_p6 }
  0x42   : > { %p822_p11 = pnand %p821_p13, %p815_p10 }
  0x44   : > { %825 = shalt.err (!%p822_p11)
}
  0x45   : > { %682 = dma.hbm_to_vmem [thread:$0]  (!%p1052_p5), %s1059_s10, 128, %s254_s23, %s242_s8  }
  0x46   : > { %262 = sbr.rel (%p1002_p8) target bundleno = 500 (0x1f4), region = 36  ;;  %s1078_s2 = sand.u32 (!%p1002_p8), 1, %s898_s18  }
  0x47   : > { %s1081_s15 = sshll.u32 (!%p1002_p8), %s1078_s2, 3  ;;  %s265_s29 = scalar_lea.sflag (!%p1002_p8), [#allocation5], %s1078_s2 }
  0x48   : > { %s268_s6 = scalar_lea.vmem (!%p1002_p8), [#allocation4], %s1081_s15 }
  0x4b   : > { %877 = dma.done.wait (%p992_p4), %s265_s29, 128  }
  0x4c   : > { %879 = vsyncadd (%p992_p4), %s265_s29, 4294967168  ;;  %s273_s26 = sand.u32 1, %s983_s3   ;;  %s277_s10 = scalar_lea.vmem [#allocation7], %s1081_s15 }
  0x4d   : > { %s274_s7 = scalar_lea.sflag [#allocation8], %s273_s26 }
  0x4e   : > { %881 = dma.done.wait (%p992_p4), %s274_s7, 128  }
  0x4f   : > { %883 = vsyncadd (%p992_p4), %s274_s7, 4294967168 }
  0x50   : > { %885 = dma.done.wait (%p73_p1), [#allocation8], 512  }
  0x51   : > { %887 = vsyncadd (%p73_p1), [#allocation8], 4294966784  ;;  %v921_v0 = vmov 0.0   ;;  %vm922_vm0 = vmmov 0   ;;  %v319_v1 = vld [vmem:[#allocation9 + $0x18] sm:$0xff]  ;;  %v318_v2 = vld [vmem:[#allocation9 + $0x10] sm:$0xff] }
  0x52   : > { %646 = vmatprep.subr.mxu0 %v921_v0  ;;  %654 = vmatprep.mubr.msk.f32.mxu0 %vm922_vm0, %v921_v0  ;;  %v317_v3 = vld [vmem:[#allocation9 + $0x8] sm:$0xff]  ;;  %v316_v4 = vld [vmem:[#allocation9] sm:$0xff]  ;;  %vm320_vm1 = vcmask 261120   ;;  %v396_v6 = vld [vmem:[%s277_s10] sm:$0xff]  ;;  %s397_s3 = sld [smem:[#allocation3]]  ;;  %s636_s24 = sshll.u32 %s906_s20, 7 }
  0x53   : > { %657 = vmatprep.subr.mxu1 %v921_v0  ;;  %659 = vmatprep.mubr.msk.f32.mxu1 %vm922_vm0, %v921_v0  ;;  %v315_v5 = vld [vmem:[%s268_s6] sm:$0xff]  ;;  %s310_s13 = scalar_lea.vmem [#allocation10], %s1081_s15  ;;  %vm476_vm2 = vcmask 64512   ;;  %s1104_s8 = scalar_lea.hbm %s1150_s4, %s636_s24 }
  0x54   : > { %647 = vmatpush3.msra.mxu0 %v319_v1  ;;  %658 = vmatpush3.xpose.msk.msra.mxu1 %vm320_vm1, %v396_v6  ;;  %s495_s5 = sshll.u32 %s310_s13, 4  ;;  %s479_s9 = scalar_lea.sflag [#allocation6], %s1078_s2  ;;  %s496_s5 = int_to_ptr.vmem [resolvable:$true] %s495_s5 }
  0x55   : > { %648 = vmatprep.subr.mxu0 %v921_v0  ;;  %s826_s11 = scalar_lea.vmem %s496_s5, 128  ;;  %s923_s20 = smov [#allocation10]  }
  0x56   : > { %649 = vmatpush3.msra.mxu0 %v318_v2  ;;  %p827_p1 = scmp.ne.s32.totalorder %s496_s5, %s826_s11  ;;  %s830_s28 = sshll.u32 %s923_s20, 4  ;;  %s831_s28 = int_to_ptr.vmem [resolvable:$false] %s830_s28 }
  0x57   : > { %650 = vmatprep.subr.mxu0 %v921_v0  ;;  %s832_s27 = scalar_lea.vmem %s831_s28, 256  ;;  %p833_p10 = scmp.lt.s32.totalorder %s496_s5, %s831_s28 }
  0x58   : > { %651 = vmatpush3.msra.mxu0 %v317_v3  ;;  %v398_v10 = vstv %s397_s3  ;;  %p828_p4 = pnand %p827_p1, %p1035_p0  ;;  %p834_p5 = scmp.lt.s32.totalorder %s832_s27, %s826_s11 }
  0x59   : > { %652 = vmatprep.subr.mxu0 %v921_v0 }
  0x5a   : > { %653 = vmatpush3.msra.mxu0 %v316_v4  ;;  %p829_p8 = pneg %p828_p4  ;;  %p835_p7 = por %p834_p5, %p833_p10 }
  0x5b   : > { %655 = vmatmul.mubr.msk.f32.vlgmr.msra.gmra.mxu0 %vm320_vm1, %v315_v5 }
  0x5c   : > { %p836_p3 = pnand %p835_p7, %p829_p8 }
 0x11b   : > { %v390_v7 = vpop.f32.mrf.mxu0 }
 0x11c   : > { %394 = vst.msk [vmem:[#allocation2] sm:$0xff] %vm320_vm1, %v390_v7 }
 0x11d   : > { %v656_v8 = vpop.f32.mrf.mxu0 }
 0x123   : > { %v395_v9 = vld [vmem:[#allocation2] sm:$0xff] }
 0x124   : > { %660 = vmatmul.mubr.msk.f32.vlgmr.msra.gmra.mxu1 %vm320_vm1, %v395_v9 }
 0x1e4   : > { %v472_v11 = vpop.f32.mrf.mxu1 }
 0x1e5   : > { %v473_v12 = vadd.f32 %v472_v11, %v398_v10 }
 0x1e6   : > { %v661_v13 = vpop.f32.mrf.mxu1 }
 0x1e7   : > { %477 = vst.msk [vmem:[%s310_s13] sm:$0xff] %vm476_vm2, %v473_v12 }
 0x1e8   : > { %839 = shalt.err (!%p836_p3)
}
 0x1e9   : > { %s840_s15 = scalar_lea.hbm %s1104_s8, 128  ;;  %s844_s6 = scalar_lea.hbm %s1150_s4, 256 }
 0x1ea   : > { %p841_p2 = scmp.ne.s32.totalorder %s1104_s8, %s840_s15  ;;  %p845_p12 = scmp.lt.s32.totalorder %s1104_s8, %s1150_s4 }
 0x1eb   : > { %p846_p13 = scmp.lt.s32.totalorder %s844_s6, %s840_s15 }
 0x1ec   : > { %p842_p6 = pnand %p841_p2, %p1035_p0 }
 0x1ed   : > { %p847_p11 = por %p846_p13, %p845_p12 }
 0x1ee   : > { %p843_p9 = pneg %p842_p6 }
 0x1f0   : > { %p848_p1 = pnand %p847_p11, %p843_p9 }
 0x1f2   : > { %851 = shalt.err (!%p848_p1)
}
 0x1f3   : > { %670 = dma.vmem_to_hbm [thread:$0]  (%p1035_p0), %s496_s5, 128, %s1104_s8, %s479_s9  }
 0x1f4 PF: > { %s507_s10 = sand.u32 1, %s894_s17   ;;  %p1161_p4 = scmp.ne.s32.totalorder %s1153_s25, 0 }
 0x1f5   : > { %p1162_p8 = scmp.ge.s32.totalorder %s914_s22, 2  ;;  %s508_s3 = scalar_lea.sflag [#allocation6], %s507_s10 }
 0x1f7   : > { %p684_p10 = pnand %p1162_p8, %p1161_p4 }
 0x1f9   : > { %p685_p5 = pneg %p684_p10 }
 0x1fb   : > { %889 = dma.done.wait (%p685_p5), %s508_s3, 128  }
 0x1fc   : > { %891 = vsyncadd (%p685_p5), %s508_s3, 4294967168  ;;  %s24_s22 = sadd.s32 1, %s914_s22   ;;  %s1163_s17 = smov %s898_s18 }
 0x1fd   : > { %p21_p7 = scmp.ge.s32.totalorder %s24_s22, 4   ;;  %s1164_s18 = smov %s902_s19 }
 0x1fe   : > { %s1165_s19 = smov %s1044_s16  ;;  %s1166_s20 = smov %s910_s21 }
 0x1ff   : > { %s1167_s21 = smov %s1169_s30  ;;  %23 = sbr.rel (!%p21_p7) target bundleno = 11 (0xb), region = 103 }
 0x204   :  { %513 = vsyncpa [#allocation5], 1 }
 0x205   :  { %515 = vsyncpa [#allocation5 + $0x1], 1 }
 0x206   :  { %516 = vsyncpa [#allocation8], 1 }
 0x207   :  { %518 = vsyncpa [#allocation8 + $0x1], 1 }
 0x208   :  { %519 = vsyncpa [#allocation6], 1 }
 0x209   :  { %521 = vsyncpa [#allocation6 + $0x1], 1 }

</bundles_post_ra>
